<compile_context>
chip_gen: v5e
topology: v5e:2x2
jax: 0.10.0
libtpu: 0.0.40
codegen_flags: <defaults>
</compile_context>

<pallas_src>
import jax
import jax.numpy as jnp
from jax import lax
from jax.experimental import pallas as pl
from jax.experimental.pallas import tpu as pltpu

LATENT_DIM = 8
HIDDEN_DIM = 128
MAX_BATCH_TILE = 4096            # VMEM-safe on v5e/v6e/v7x at these shapes
SMALL_BATCH_SINGLE_BLOCK = 512   # below this, one full-extent block


def _round_up(x: int, m: int) -> int:
    return ((x + m - 1) // m) * m


def _pick_batch_tile(b: int) -> int:
    """Batch tile: full batch for small B (a full-extent block is always
    (8,128)-legal, no padding); for large B a multiple-of-128 tile sized for
    >=2 grid steps (v7x megacore) and capped for VMEM headroom (v5e)."""
    if b <= SMALL_BATCH_SINGLE_BLOCK:
        return b
    return min(MAX_BATCH_TILE, _round_up(pl.cdiv(b, 2), 128))


def _latent_encoder_kernel(x_ref, w1_ref, b1_ref, w2t_ref, b2t_ref, o_ref):
    # x_ref:   (TB, in_dim)   f32  streamed
    # w1_ref:  (in_dim, 128)  f32  resident
    # b1_ref:  (1, 128)       f32  resident
    # w2t_ref: (latent, 128)  f32  resident (pre-transposed w2)
    # b2t_ref: (latent, 1)    f32  resident (pre-transposed b2)
    # o_ref:   (latent, TB)   f32  lane-dense store
    h = jnp.dot(x_ref[...], w1_ref[...], preferred_element_type=jnp.float32)
    h = jnp.maximum(h + b1_ref[...], 0.0)
    # Transposed second layer: contract the shared 128-axis of w2^T and h so
    # the result is already (latent, TB) -- no in-kernel transpose, and the
    # store is dense across all tb lanes (unmasked vst).
    out_t = lax.dot_general(
        w2t_ref[...], h,
        dimension_numbers=(((1,), (1,)), ((), ())),
        preferred_element_type=jnp.float32)
    o_ref[...] = out_t + b2t_ref[...]


@jax.jit
def latent_encoder_forward(x, w1, b1, w2, b2):
    """x: (B, W, F) f32. w1: (in_dim, 128), b1: (1, 128),
    w2: (128, latent), b2: (1, latent). Returns (B, latent) f32."""
    b, w, f = x.shape
    in_dim = w * f
    latent = w2.shape[1]

    x_flat = x.reshape(b, in_dim)     # metadata-only reshape
    w2_t = w2.T                       # (latent, 128)  tiny, fused under jit
    b2_t = b2.reshape(latent, 1)      # (latent, 1)

    tb = _pick_batch_tile(b)
    grid = (pl.cdiv(b, tb),)          # ragged final block handled by Pallas

    out_t = pl.pallas_call(
        _latent_encoder_kernel,
        out_shape=jax.ShapeDtypeStruct((latent, b), jnp.float32),
        grid=grid,
        in_specs=[
            pl.BlockSpec((tb, in_dim), lambda i: (i, 0)),          # streamed
            pl.BlockSpec((in_dim, HIDDEN_DIM), lambda i: (0, 0)),  # resident
            pl.BlockSpec((1, HIDDEN_DIM), lambda i: (0, 0)),       # resident
            pl.BlockSpec((latent, HIDDEN_DIM), lambda i: (0, 0)),  # resident
            pl.BlockSpec((latent, 1), lambda i: (0, 0)),           # resident
        ],
        out_specs=pl.BlockSpec((latent, tb), lambda i: (0, i)),
        compiler_params=pltpu.CompilerParams(
            dimension_semantics=("parallel",),   # cross-TC sharding on v7x
        ),
    )(x_flat, w1, b1, w2_t, b2_t)

    return out_t.T                    # (B, latent)


def init_params(key, in_dim):
    # Deterministic init mimicking nn.Linear defaults (U(-1/sqrt(fan_in), +)).
    k1, k2, k3, k4 = jax.random.split(key, 4)
    bound1 = 1.0 / jnp.sqrt(in_dim)
    bound2 = 1.0 / jnp.sqrt(HIDDEN_DIM)
    w1 = jax.random.uniform(k1, (in_dim, HIDDEN_DIM), jnp.float32, -bound1, bound1)
    b1 = jax.random.uniform(k2, (1, HIDDEN_DIM), jnp.float32, -bound1, bound1)
    w2 = jax.random.uniform(k3, (HIDDEN_DIM, LATENT_DIM), jnp.float32, -bound2, bound2)
    b2 = jax.random.uniform(k4, (1, LATENT_DIM), jnp.float32, -bound2, bound2)
    return w1, b1, w2, b2


if __name__ == "__main__":
    key = jax.random.PRNGKey(0)
    kx, kp, kx2 = jax.random.split(key, 3)

    B, W, F = 2, 8, 4            # input_dim = W*F = 32
    in_dim = W * F

    x = jax.random.normal(kx, (B, W, F), jnp.float32)
    w1, b1, w2, b2 = init_params(kp, in_dim)

    def ref_forward(xs):
        xf = xs.reshape(xs.shape[0], -1)
        return jnp.maximum(xf @ w1 + b1, 0.0) @ w2 + b2

    # Small-batch path (single full-extent block, grid=(1,)).
    out = jax.block_until_ready(latent_encoder_forward(x, w1, b1, w2, b2))
    assert out.shape == (B, LATENT_DIM)
    assert jnp.allclose(out, ref_forward(x), atol=2e-2, rtol=2e-2), "mismatch (B=2)"

    # Tiled path: multiple grid steps with a ragged final block.
    B2 = 700
    x2 = jax.random.normal(kx2, (B2, W, F), jnp.float32)
    out2 = jax.block_until_ready(latent_encoder_forward(x2, w1, b1, w2, b2))
    assert out2.shape == (B2, LATENT_DIM)
    assert jnp.allclose(out2, ref_forward(x2), atol=2e-2, rtol=2e-2), "mismatch (B=700)"

    print("KERNEL_OK")
</pallas_src>

<mosaic_0001>
module attributes {stable_mosaic.version = 11 : i64} {
  func.func @_latent_encoder_kernel(%arg0: i32, %arg1: memref<2x32xf32, #tpu.memory_space<vmem>>, %arg2: memref<32x128xf32, #tpu.memory_space<vmem>>, %arg3: memref<1x128xf32, #tpu.memory_space<vmem>>, %arg4: memref<8x128xf32, #tpu.memory_space<vmem>>, %arg5: memref<8x1xf32, #tpu.memory_space<vmem>>, %arg6: memref<8x2xf32, #tpu.memory_space<vmem>>) attributes {dimension_semantics = [#tpu.dimension_semantics<parallel>], iteration_bounds = array<i64: 1>, scalar_prefetch = 0 : i64, scratch_operands = 0 : i64, tpu.core_type = #tpu.core_type<tc>, window_params = [{transform_indices = @transform_0, window_bounds = array<i64: 2, 32>}, {pipeline_mode = #tpu.pipeline_mode<synchronous>, transform_indices = @transform_1, window_bounds = array<i64: 32, 128>}, {pipeline_mode = #tpu.pipeline_mode<synchronous>, transform_indices = @transform_2, window_bounds = array<i64: 1, 128>}, {pipeline_mode = #tpu.pipeline_mode<synchronous>, transform_indices = @transform_3, window_bounds = array<i64: 8, 128>}, {pipeline_mode = #tpu.pipeline_mode<synchronous>, transform_indices = @transform_4, window_bounds = array<i64: 8, 1>}, {transform_indices = @transform_5, window_bounds = array<i64: 8, 2>}]} {
    %c0 = arith.constant 0 : index
    %c0_0 = arith.constant 0 : index
    %0 = vector.load %arg1[%c0, %c0_0] : memref<2x32xf32, #tpu.memory_space<vmem>>, vector<2x32xf32>
    %c0_1 = arith.constant 0 : index
    %c0_2 = arith.constant 0 : index
    %1 = vector.load %arg2[%c0_1, %c0_2] : memref<32x128xf32, #tpu.memory_space<vmem>>, vector<32x128xf32>
    %cst = arith.constant dense<0.000000e+00> : vector<2x128xf32>
    %2 = tpu.matmul %0, %1, %cst {dimension_numbers = #tpu.dot_dimension_numbers<[1], [0], [0], [1], [0, 0, 1, 1], [], []>} : vector<2x32xf32>, vector<32x128xf32>, vector<2x128xf32> -> vector<2x128xf32>
    %c0_3 = arith.constant 0 : index
    %c0_4 = arith.constant 0 : index
    %3 = vector.load %arg3[%c0_3, %c0_4] : memref<1x128xf32, #tpu.memory_space<vmem>>, vector<1x128xf32>
    %4 = vector.broadcast %3 : vector<1x128xf32> to vector<2x128xf32>
    %5 = arith.addf %2, %4 : vector<2x128xf32>
    %cst_5 = arith.constant 0.000000e+00 : f32
    %6 = vector.broadcast %cst_5 : f32 to vector<2x128xf32>
    %7 = arith.maximumf %5, %6 : vector<2x128xf32>
    %c0_6 = arith.constant 0 : index
    %c0_7 = arith.constant 0 : index
    %8 = vector.load %arg4[%c0_6, %c0_7] : memref<8x128xf32, #tpu.memory_space<vmem>>, vector<8x128xf32>
    %cst_8 = arith.constant dense<0.000000e+00> : vector<8x2xf32>
    %9 = tpu.matmul %8, %7, %cst_8 {dimension_numbers = #tpu.dot_dimension_numbers<[1], [1], [0], [0], [0, 0, 1, 0], [], []>} : vector<8x128xf32>, vector<2x128xf32>, vector<8x2xf32> -> vector<8x2xf32>
    %c0_9 = arith.constant 0 : index
    %c0_10 = arith.constant 0 : index
    %10 = vector.load %arg5[%c0_9, %c0_10] : memref<8x1xf32, #tpu.memory_space<vmem>>, vector<8x1xf32>
    %11 = vector.broadcast %10 : vector<8x1xf32> to vector<8x2xf32>
    %12 = arith.addf %9, %11 : vector<8x2xf32>
    %c0_11 = arith.constant 0 : index
    %c0_12 = arith.constant 0 : index
    %13 = vector.load %arg6[%c0_11, %c0_12] : memref<8x2xf32, #tpu.memory_space<vmem>>, vector<8x2xf32>
    tpu.vector_store %arg6[%c0_11, %c0_12], %12 {strides = array<i32>} : memref<8x2xf32, #tpu.memory_space<vmem>>, vector<8x2xf32>,
    return
  }
  func.func @transform_0(%arg0: i32) -> (i32, i32) {
    %c0_i32 = arith.constant 0 : i32
    %c0_i32_0 = arith.constant 0 : i32
    return %arg0, %c0_i32 : i32, i32
  }
  func.func @transform_1(%arg0: i32) -> (i32, i32) {
    %c0_i32 = arith.constant 0 : i32
    %c0_i32_0 = arith.constant 0 : i32
    %c0_i32_1 = arith.constant 0 : i32
    return %c0_i32, %c0_i32_0 : i32, i32
  }
  func.func @transform_2(%arg0: i32) -> (i32, i32) {
    %c0_i32 = arith.constant 0 : i32
    %c0_i32_0 = arith.constant 0 : i32
    %c0_i32_1 = arith.constant 0 : i32
    return %c0_i32, %c0_i32_0 : i32, i32
  }
  func.func @transform_3(%arg0: i32) -> (i32, i32) {
    %c0_i32 = arith.constant 0 : i32
    %c0_i32_0 = arith.constant 0 : i32
    %c0_i32_1 = arith.constant 0 : i32
    return %c0_i32, %c0_i32_0 : i32, i32
  }
  func.func @transform_4(%arg0: i32) -> (i32, i32) {
    %c0_i32 = arith.constant 0 : i32
    %c0_i32_0 = arith.constant 0 : i32
    %c0_i32_1 = arith.constant 0 : i32
    return %c0_i32, %c0_i32_0 : i32, i32
  }
  func.func @transform_5(%arg0: i32) -> (i32, i32) {
    %c0_i32 = arith.constant 0 : i32
    %c0_i32_0 = arith.constant 0 : i32
    return %c0_i32, %arg0 : i32, i32
  }
}

</mosaic_0001>

<bundles_post_ra>
// kernel: latent_encoder_forward.1
= control target key start
LH: loop header
LB: loop body
LE: loop exit
PB: predicated region body
PF: predicated region fallthrough
CT: control target
= control target key end

     0   :  { %vm29_vm0 = vcmask 261120   ;;  %v91_v6 = vmov 0   ;;  %vm81_vm1 = vcmask 15360   ;;  %s149_s1 = inlined_call_operand.vmem [shape: f32[32,128], index: 1, kind: input, shape index: {}]   ;;  %s150_s0 = inlined_call_operand.vmem [shape: f32[2,32], index: 0, kind: input, shape index: {}]   ;;  %s151_s2 = inlined_call_operand.vmem [shape: f32[1,128], index: 2, kind: input, shape index: {}]   ;;  %s152_s4 = inlined_call_operand.vmem [shape: f32[8,1], index: 4, kind: input, shape index: {}]   ;;  %s153_s3 = inlined_call_operand.vmem [shape: f32[8,128], index: 3, kind: input, shape index: {}]   ;;  %s154_s5 = inlined_call_operand.vmem [shape: f32[8,2], index: 5, kind: output, shape index: {}]  }
   0x1   :  { %v24_v0 = vld [vmem:[%s149_s1 + $0x18] sm:$0xff]  ;;  %v23_v1 = vld [vmem:[%s149_s1 + $0x10] sm:$0xff]  ;;  %v22_v2 = vld [vmem:[%s149_s1 + $0x8] sm:$0xff]  ;;  %89 = vset.pattern.permute.xlu0 %v91_v6 }
   0x2   :  { %45 = vmatpush.msra.mxu0 %v24_v0  ;;  %v21_v3 = vld [vmem:[%s149_s1] sm:$0xff] }
   0x3   :  { %v20_v4 = vld [vmem:[%s150_s0] sm:$0x3] }
   0x4   :  { %46 = vmatpush.msra.mxu0 %v23_v1  ;;  %v55_v5 = vld [vmem:[%s152_s4] sm:$0xff] }
   0x5   :  { %58 = vperm.xlu0 %89, %v55_v5   ;;  %v90_v7 = vld [vmem:[%s151_s2] ss:$0 sm:$0xff] }
   0x6   :  { %47 = vmatpush.msra.mxu0 %v22_v2  ;;  %v54_v11 = vld [vmem:[%s153_s3] sm:$0xff] }
   0x8   :  { %48 = vmatpush.msra.mxu0 %v21_v3 }
   0x9   :  { %87 = vmatmul.msk.f32.vlgmr.msra.gmra.mxu0 %vm29_vm0, %v20_v4 }
  0x77   :  { %v59_v12 = vpop.permute.xlu0 %58 }
  0x86   :  { %v50_v8 = vpop.f32.mrf.mxu0 }
  0x87   :  { %v51_v9 = vadd.f32 %v90_v7, %v50_v8 }
  0x89   :  { %v53_v10 = vmax.f32 %v51_v9, 0.0 }
  0x8b   :  { %76 = vmatpush.xpose.msra.mxu1 %v53_v10 }
  0x8e   :  { %77 = vmatmul.f32.vlgmr.msra.gmra.mxu1 %v54_v11 }
 0x10b   :  { %v78_v13 = vpop.f32.mrf.mxu1 }
 0x10c   :  { %v79_v14 = vadd.f32 %v78_v13, %v59_v12 }
 0x10e   :  { %82 = vst.msk [vmem:[%s154_s5] sm:$0xff] %vm81_vm1, %v79_v14 }

</bundles_post_ra>
